<compile_context>
chip_gen: v6e
topology: v6e:2x2x1
jax: 0.10.0
libtpu: 0.0.40
codegen_flags: <defaults>
</compile_context>

<pallas_src>
import functools

import jax
import jax.numpy as jnp
import numpy as np
from jax.experimental import pallas as pl
from jax.experimental.pallas import tpu as pltpu


def _dc_ce_kernel(x_ref, t_ref, ce_ref, int_ref, den_ref,
                  acc_ce, acc_int, acc_den, *, hw_valid, needs_mask):
    h = pl.program_id(2)
    num_h = pl.num_programs(2)

    @pl.when(h == 0)
    def _():
        acc_ce[...] = jnp.zeros_like(acc_ce)
        acc_int[...] = jnp.zeros_like(acc_int)
        acc_den[...] = jnp.zeros_like(acc_den)

    logits = x_ref[0].astype(jnp.float32)       # (C, T): classes on sublanes, pixels on lanes
    tgt = t_ref[0].astype(jnp.int32)            # (1, T): int8 in HBM, upcast in VMEM
    C, T = logits.shape

    # Softmax / log-sum-exp along the class (sublane) axis; pixels stay lane-dense.
    m = jnp.max(logits, axis=0, keepdims=True)              # (1, T)
    e = jnp.exp(logits - m)                                  # (C, T)
    s = jnp.sum(e, axis=0, keepdims=True)                    # (1, T)
    inv_s = pl.reciprocal(s, approx=True)                    # EUP slot, VALU-free
    probs = e * inv_s                                        # (C, T)
    lse = m + jnp.log(s)                                     # (1, T)  (exact CE path)

    # One boolean mask reused by both CE and dice.
    classes = jax.lax.broadcasted_iota(jnp.int32, (C, T), 0)
    mask = tgt == classes                                    # (C, T)
    onehot = mask.astype(jnp.float32)

    true_logit = jnp.sum(jnp.where(mask, logits, 0.0), axis=0, keepdims=True)   # (1, T)
    ce_tile = lse - true_logit                               # (1, T)
    int_tile = jnp.where(mask, probs, 0.0)                   # (C, T)
    den_tile = probs + onehot                                # (C, T)

    if needs_mask:                                           # compile-time Python bool
        base = (pl.program_id(1) * num_h + h) * T
        pix = base + jax.lax.broadcasted_iota(jnp.int32, (1, T), 1)
        validf = (pix < hw_valid).astype(jnp.float32)        # (1, T)
        ce_tile = ce_tile * validf
        int_tile = int_tile * validf
        den_tile = den_tile * validf

    # Per-tile lane reductions into tiny accumulators (XLU reduce, no full-width RMW).
    acc_ce[...] += jnp.sum(ce_tile, axis=1, keepdims=True)    # (1, 1)
    acc_int[...] += jnp.sum(int_tile, axis=1, keepdims=True)  # (C, 1)
    acc_den[...] += jnp.sum(den_tile, axis=1, keepdims=True)  # (C, 1)

    @pl.when(h == num_h - 1)
    def _():
        ce_ref[...] = jnp.full(ce_ref.shape, jnp.sum(acc_ce[...]), dtype=jnp.float32)
        int_ref[...] = jnp.broadcast_to(acc_int[...], int_ref.shape)
        den_ref[...] = jnp.broadcast_to(acc_den[...], den_ref.shape)


def _round_up(x, m):
    return ((x + m - 1) // m) * m


def _vmem_budget_bytes():
    cap = 64 << 20                                  # conservative default (= v7x physical VMEM)
    try:
        info = pltpu.get_tpu_info()
        cap = int(getattr(info, "vmem_capacity_bytes", cap))
    except Exception:
        pass
    return max(16 << 20, min((cap * 3) // 4, 100 << 20))


def _choose_tiling(hw, max_tile, hw_tile=None):
    """Return (tile_size, padded_hw). tile_size divides padded_hw."""
    if hw_tile is not None:
        return hw_tile, _round_up(hw, hw_tile)
    hw128 = _round_up(hw, 128)
    max_tile = max(128, max_tile - max_tile % 128)
    if hw128 <= max_tile:
        return hw128, hw128
    # Prefer a large multiple-of-128 divisor of hw128 (no extra padding).
    t = max_tile
    while t >= max(128, max_tile // 2):
        if hw128 % t == 0:
            return t, hw128
        t -= 128
    # Otherwise pad hw up to a multiple of the max tile (pad < one tile).
    return max_tile, _round_up(hw128, max_tile)


def dc_and_ce_loss(net_output, target, smooth=1.0, smooth_in_nom=True, hw_tile=None):
    """net_output: (N, C, *spatial) float logits (f32 or bf16 -- bf16 halves the dominant
    HBM stream); target: (N, *spatial) integer labels in [0, C).
    `smooth_in_nom` is a bool tied to `smooth`, matching SoftDiceLoss(smooth_in_nom=True)."""
    # TODO(synk): ignore_index (torch CrossEntropyLoss default -100) is not handled; the
    # original module also requires targets in [0, C) (scatter_ would error otherwise).
    N, C = net_output.shape[0], net_output.shape[1]
    spatial = net_output.shape[2:]
    HW = int(np.prod(spatial)) if len(spatial) else 1
    smooth = float(smooth)
    smooth_nom = smooth if smooth_in_nom else 0.0

    x_bytes = net_output.dtype.itemsize
    t_dtype = jnp.int8 if C <= 127 else jnp.int32        # int8 target stream when classes fit
    t_bytes = jnp.dtype(t_dtype).itemsize

    budget = _vmem_budget_bytes()
    # double-buffered inputs + ~8 live (C,T)/(1,T) f32 temporaries, per lane of tile
    per_lane = 2 * C * x_bytes + 2 * t_bytes + (8 * C + 8) * 4
    max_tile = int(min(max(128, budget // per_lane), 32768))
    T, HW_pad = _choose_tiling(HW, max_tile, hw_tile)
    num_h = HW_pad // T
    needs_mask = HW_pad != HW

    # Odd batch (incl. N=1): split HW over a second "parallel" axis so both v7x cores work.
    hw_splits = 2 if (N % 2 != 0 and num_h % 2 == 0) else 1
    num_h_inner = num_h // hw_splits

    # No transpose: NCHW metadata-reshaped to (N, C, HW) / (N, 1, HW); logits keep their dtype.
    x = net_output.reshape(N, C, HW)
    t = target.reshape(N, 1, HW).astype(t_dtype)
    if needs_mask:
        pad = HW_pad - HW
        x = jnp.pad(x, ((0, 0), (0, 0), (0, pad)))
        t = jnp.pad(t, ((0, 0), (0, 0), (0, pad)))

    # TODO(synk): for C < 8 on v6e/v7x (VALU-bound with bf16), re-tile to (1, C, S, 128)
    # blocks to fix the C/8 sublane occupancy; kernel is typically still HBM-bound so skipped.
    kernel = functools.partial(_dc_ce_kernel, hw_valid=HW, needs_mask=needs_mask)

    ce_part, int_part, den_part = pl.pallas_call(
        kernel,
        out_shape=(jax.ShapeDtypeStruct((N, hw_splits, 128), jnp.float32),
                   jax.ShapeDtypeStruct((N, hw_splits, C, 128), jnp.float32),
                   jax.ShapeDtypeStruct((N, hw_splits, C, 128), jnp.float32)),
        grid_spec=pltpu.PrefetchScalarGridSpec(
            num_scalar_prefetch=0,
            grid=(N, hw_splits, num_h_inner),
            in_specs=[
                pl.BlockSpec((1, C, T), lambda n, s, h: (n, 0, s * num_h_inner + h)),
                pl.BlockSpec((1, 1, T), lambda n, s, h: (n, 0, s * num_h_inner + h)),
            ],
            out_specs=[
                pl.BlockSpec((1, 1, 128), lambda n, s, h: (n, s, 0)),
                pl.BlockSpec((1, 1, C, 128), lambda n, s, h: (n, s, 0, 0)),
                pl.BlockSpec((1, 1, C, 128), lambda n, s, h: (n, s, 0, 0)),
            ],
            scratch_shapes=[
                pltpu.VMEM((1, 1), jnp.float32),   # CE partial sum
                pltpu.VMEM((C, 1), jnp.float32),   # dice intersect accumulator
                pltpu.VMEM((C, 1), jnp.float32),   # dice denom accumulator
            ],
        ),
        compiler_params=pltpu.CompilerParams(
            dimension_semantics=("parallel", "parallel", "arbitrary"),
            vmem_limit_bytes=int(budget)),
    )(x, t)

    ce_mean = jnp.sum(ce_part[..., 0]) / (N * HW)
    intersect = jnp.sum(int_part[..., 0], axis=1)       # (N, C): combine HW splits
    denom = jnp.sum(den_part[..., 0], axis=1)
    dice_mean = jnp.mean(-(2.0 * intersect + smooth_nom) / (denom + smooth))
    return ce_mean + dice_mean


def _reference_loss(x, y, smooth=1.0, smooth_in_nom=True):
    """Pure-JAX reference matching the PyTorch module (default kwargs)."""
    N, C = x.shape[0], x.shape[1]
    s_nom = smooth if smooth_in_nom else 0.0
    logits = jnp.moveaxis(x, 1, -1).reshape(-1, C).astype(jnp.float32)
    tgt = y.reshape(-1)
    lse = jax.scipy.special.logsumexp(logits, axis=-1)
    ce = jnp.mean(lse - logits[jnp.arange(logits.shape[0]), tgt])

    probs = jax.nn.softmax(x.astype(jnp.float32), axis=1)
    onehot = jax.nn.one_hot(y, C, axis=1, dtype=jnp.float32)
    axes = tuple(range(2, x.ndim))
    intersect = jnp.sum(probs * onehot, axis=axes)
    denom = jnp.sum(probs + onehot, axis=axes)
    dice = jnp.mean(-(2.0 * intersect + s_nom) / (denom + smooth))
    return ce + dice


if __name__ == "__main__":
    key = jax.random.PRNGKey(0)
    k1, k2, k3, k4 = jax.random.split(key, 4)

    # Tolerance note: the only deviation source vs. the exact reference is the approximate
    # EUP reciprocal in the dice softmax (CE uses the exact lse path), so 0.5% is ample.
    RTOL, ATOL = 5e-3, 1e-4

    # 1) f32, N=2, C=4, 16x16; hw_tile=128 forces 2 spatial tiles -> multi-tile accumulate path.
    N, C, H, W = 2, 4, 16, 16
    x = jax.random.normal(k1, (N, C, H, W), dtype=jnp.float32)
    y = jax.random.randint(k2, (N, H, W), 0, C, dtype=jnp.int32)
    out = jax.block_until_ready(dc_and_ce_loss(x, y, hw_tile=128))
    ref = jax.block_until_ready(_reference_loss(x, y))
    np.testing.assert_allclose(np.asarray(out), np.asarray(ref), rtol=RTOL, atol=ATOL)

    # 2) bf16 logits (halved HBM stream, f32 math in VMEM); N=1 exercises the HW-split
    #    parallel axis that feeds the second v7x TensorCore.
    x16 = x[:1].astype(jnp.bfloat16)
    out = jax.block_until_ready(dc_and_ce_loss(x16, y[:1], hw_tile=128))
    ref = jax.block_until_ready(_reference_loss(x16.astype(jnp.float32), y[:1]))
    np.testing.assert_allclose(np.asarray(out), np.asarray(ref), rtol=RTOL, atol=ATOL)

    # 3) HW = 100 (not a multiple of 128) -> pad-to-128 + in-kernel validity mask path.
    N2, C2, H2, W2 = 2, 5, 10, 10
    x3 = jax.random.normal(k3, (N2, C2, H2, W2), dtype=jnp.float32)
    y3 = jax.random.randint(k4, (N2, H2, W2), 0, C2, dtype=jnp.int32)
    out = jax.block_until_ready(dc_and_ce_loss(x3, y3))
    ref = jax.block_until_ready(_reference_loss(x3, y3))
    np.testing.assert_allclose(np.asarray(out), np.asarray(ref), rtol=RTOL, atol=ATOL)

    print("KERNEL_OK")
</pallas_src>

<mosaic_0001>
module attributes {stable_mosaic.version = 11 : i64} {
  func.func @_dc_ce_kernel(%arg0: i32, %arg1: i32, %arg2: i32, %arg3: memref<1x4x128xf32, #tpu.memory_space<vmem>>, %arg4: memref<1x1x128xi8, #tpu.memory_space<vmem>>, %arg5: memref<1x1x128xf32, #tpu.memory_space<vmem>>, %arg6: memref<1x1x4x128xf32, #tpu.memory_space<vmem>>, %arg7: memref<1x1x4x128xf32, #tpu.memory_space<vmem>>, %arg8: memref<1x1xf32, #tpu.memory_space<vmem>>, %arg9: memref<4x1xf32, #tpu.memory_space<vmem>>, %arg10: memref<4x1xf32, #tpu.memory_space<vmem>>) attributes {dimension_semantics = [#tpu.dimension_semantics<parallel>, #tpu.dimension_semantics<parallel>, #tpu.dimension_semantics<arbitrary>], iteration_bounds = array<i64: 2, 1, 2>, scalar_prefetch = 0 : i64, scratch_operands = 3 : i64, tpu.core_type = #tpu.core_type<tc>, window_params = [{transform_indices = @transform_0, window_bounds = array<i64: 1, 4, 128>}, {transform_indices = @transform_1, window_bounds = array<i64: 1, 1, 128>}, {transform_indices = @transform_2, window_bounds = array<i64: 1, 1, 128>}, {transform_indices = @transform_3, window_bounds = array<i64: 1, 1, 4, 128>}, {transform_indices = @transform_4, window_bounds = array<i64: 1, 1, 4, 128>}]} {
    %c0_i32 = arith.constant 0 : i32
    %0 = arith.cmpi eq, %arg2, %c0_i32 : i32
    %1 = arith.extui %0 : i1 to i32
    %c0_i32_0 = arith.constant 0 : i32
    %2 = arith.cmpi ne, %1, %c0_i32_0 : i32
    scf.if %2 {
      %cst_26 = arith.constant 0.000000e+00 : f32
      %51 = vector.broadcast %cst_26 : f32 to vector<1x1xf32>
      %c0_27 = arith.constant 0 : index
      %c0_28 = arith.constant 0 : index
      %52 = vector.load %arg8[%c0_27, %c0_28] : memref<1x1xf32, #tpu.memory_space<vmem>>, vector<1x1xf32>
      tpu.vector_store %arg8[%c0_27, %c0_28], %51 {strides = array<i32>} : memref<1x1xf32, #tpu.memory_space<vmem>>, vector<1x1xf32>,
      %cst_29 = arith.constant 0.000000e+00 : f32
      %53 = vector.broadcast %cst_29 : f32 to vector<4x1xf32>
      %c0_30 = arith.constant 0 : index
      %c0_31 = arith.constant 0 : index
      %54 = vector.load %arg9[%c0_30, %c0_31] : memref<4x1xf32, #tpu.memory_space<vmem>>, vector<4x1xf32>
      tpu.vector_store %arg9[%c0_30, %c0_31], %53 {strides = array<i32>} : memref<4x1xf32, #tpu.memory_space<vmem>>, vector<4x1xf32>,
      %cst_32 = arith.constant 0.000000e+00 : f32
      %55 = vector.broadcast %cst_32 : f32 to vector<4x1xf32>
      %c0_33 = arith.constant 0 : index
      %c0_34 = arith.constant 0 : index
      %56 = vector.load %arg10[%c0_33, %c0_34] : memref<4x1xf32, #tpu.memory_space<vmem>>, vector<4x1xf32>
      tpu.vector_store %arg10[%c0_33, %c0_34], %55 {strides = array<i32>} : memref<4x1xf32, #tpu.memory_space<vmem>>, vector<4x1xf32>,
    } else {
    }
    %c0 = arith.constant 0 : index
    %c0_1 = arith.constant 0 : index
    %c0_2 = arith.constant 0 : index
    %3 = vector.load %arg3[%c0, %c0_1, %c0_2] : memref<1x4x128xf32, #tpu.memory_space<vmem>>, vector<1x4x128xf32>
    %4 = vector.shape_cast %3 : vector<1x4x128xf32> to vector<4x128xf32>
    %c0_3 = arith.constant 0 : index
    %c0_4 = arith.constant 0 : index
    %c0_5 = arith.constant 0 : index
    %5 = vector.load %arg4[%c0_3, %c0_4, %c0_5] : memref<1x1x128xi8, #tpu.memory_space<vmem>>, vector<1x1x128xi8>
    %6 = vector.shape_cast %5 : vector<1x1x128xi8> to vector<1x128xi8>
    %7 = arith.extsi %6 : vector<1x128xi8> to vector<1x128xi32>
    %cst = arith.constant dense<0xFF800000> : vector<128xf32>
    %8 = vector.multi_reduction <maximumf>, %4, %cst [0] : vector<4x128xf32> to vector<128xf32>
    %9 = vector.shape_cast %8 : vector<128xf32> to vector<1x128xf32>
    %10 = vector.broadcast %9 : vector<1x128xf32> to vector<4x128xf32>
    %11 = arith.subf %4, %10 : vector<4x128xf32>
    %12 = math.exp %11 : vector<4x128xf32>
    %cst_6 = arith.constant dense<0.000000e+00> : vector<128xf32>
    %13 = vector.multi_reduction <add>, %12, %cst_6 [0] : vector<4x128xf32> to vector<128xf32>
    %14 = vector.shape_cast %13 : vector<128xf32> to vector<1x128xf32>
    %15 = tpu.reciprocal %14 {approx = true} : vector<1x128xf32> -> vector<1x128xf32>
    %16 = vector.broadcast %15 : vector<1x128xf32> to vector<4x128xf32>
    %17 = arith.mulf %12, %16 : vector<4x128xf32>
    %18 = math.log %14 : vector<1x128xf32>
    %19 = arith.addf %9, %18 : vector<1x128xf32>
    %20 = tpu.iota {dimensions = array<i32: 0>} : vector<4x128xi32>
    %21 = vector.broadcast %7 : vector<1x128xi32> to vector<4x128xi32>
    %22 = arith.cmpi eq, %21, %20 : vector<4x128xi32>
    %23 = arith.extui %22 : vector<4x128xi1> to vector<4x128xi32>
    %24 = arith.sitofp %23 : vector<4x128xi32> to vector<4x128xf32>
    %cst_7 = arith.constant 0.000000e+00 : f32
    %25 = vector.broadcast %cst_7 : f32 to vector<4x128xf32>
    %26 = arith.select %22, %4, %25 : vector<4x128xi1>, vector<4x128xf32>
    %cst_8 = arith.constant dense<0.000000e+00> : vector<128xf32>
    %27 = vector.multi_reduction <add>, %26, %cst_8 [0] : vector<4x128xf32> to vector<128xf32>
    %28 = vector.shape_cast %27 : vector<128xf32> to vector<1x128xf32>
    %29 = arith.subf %19, %28 : vector<1x128xf32>
    %cst_9 = arith.constant 0.000000e+00 : f32
    %30 = vector.broadcast %cst_9 : f32 to vector<4x128xf32>
    %31 = arith.select %22, %17, %30 : vector<4x128xi1>, vector<4x128xf32>
    %32 = arith.addf %17, %24 : vector<4x128xf32>
    %c0_10 = arith.constant 0 : index
    %c0_11 = arith.constant 0 : index
    %33 = vector.load %arg8[%c0_10, %c0_11] : memref<1x1xf32, #tpu.memory_space<vmem>>, vector<1x1xf32>
    %cst_12 = arith.constant dense<0.000000e+00> : vector<1xf32>
    %34 = vector.multi_reduction <add>, %29, %cst_12 [1] : vector<1x128xf32> to vector<1xf32>
    %35 = vector.shape_cast %34 : vector<1xf32> to vector<1x1xf32>
    %36 = arith.addf %33, %35 : vector<1x1xf32>
    %c0_13 = arith.constant 0 : index
    %c0_14 = arith.constant 0 : index
    %37 = vector.load %arg8[%c0_13, %c0_14] : memref<1x1xf32, #tpu.memory_space<vmem>>, vector<1x1xf32>
    tpu.vector_store %arg8[%c0_13, %c0_14], %36 {strides = array<i32>} : memref<1x1xf32, #tpu.memory_space<vmem>>, vector<1x1xf32>,
    %c0_15 = arith.constant 0 : index
    %c0_16 = arith.constant 0 : index
    %38 = vector.load %arg9[%c0_15, %c0_16] : memref<4x1xf32, #tpu.memory_space<vmem>>, vector<4x1xf32>
    %cst_17 = arith.constant dense<0.000000e+00> : vector<4xf32>
    %39 = vector.multi_reduction <add>, %31, %cst_17 [1] : vector<4x128xf32> to vector<4xf32>
    %40 = vector.shape_cast %39 : vector<4xf32> to vector<4x1xf32>
    %41 = arith.addf %38, %40 : vector<4x1xf32>
    %c0_18 = arith.constant 0 : index
    %c0_19 = arith.constant 0 : index
    %42 = vector.load %arg9[%c0_18, %c0_19] : memref<4x1xf32, #tpu.memory_space<vmem>>, vector<4x1xf32>
    tpu.vector_store %arg9[%c0_18, %c0_19], %41 {strides = array<i32>} : memref<4x1xf32, #tpu.memory_space<vmem>>, vector<4x1xf32>,
    %c0_20 = arith.constant 0 : index
    %c0_21 = arith.constant 0 : index
    %43 = vector.load %arg10[%c0_20, %c0_21] : memref<4x1xf32, #tpu.memory_space<vmem>>, vector<4x1xf32>
    %cst_22 = arith.constant dense<0.000000e+00> : vector<4xf32>
    %44 = vector.multi_reduction <add>, %32, %cst_22 [1] : vector<4x128xf32> to vector<4xf32>
    %45 = vector.shape_cast %44 : vector<4xf32> to vector<4x1xf32>
    %46 = arith.addf %43, %45 : vector<4x1xf32>
    %c0_23 = arith.constant 0 : index
    %c0_24 = arith.constant 0 : index
    %47 = vector.load %arg10[%c0_23, %c0_24] : memref<4x1xf32, #tpu.memory_space<vmem>>, vector<4x1xf32>
    tpu.vector_store %arg10[%c0_23, %c0_24], %46 {strides = array<i32>} : memref<4x1xf32, #tpu.memory_space<vmem>>, vector<4x1xf32>,
    %c1_i32 = arith.constant 1 : i32
    %48 = arith.cmpi eq, %arg2, %c1_i32 : i32
    %49 = arith.extui %48 : i1 to i32
    %c0_i32_25 = arith.constant 0 : i32
    %50 = arith.cmpi ne, %49, %c0_i32_25 : i32
    scf.if %50 {
      %c0_26 = arith.constant 0 : index
      %c0_27 = arith.constant 0 : index
      %51 = vector.load %arg8[%c0_26, %c0_27] : memref<1x1xf32, #tpu.memory_space<vmem>>, vector<1x1xf32>
      %52 = vector.shape_cast %51 : vector<1x1xf32> to vector<1x1x1xf32>
      %cst_28 = arith.constant dense<0.000000e+00> : vector<1xf32>
      %53 = vector.multi_reduction <add>, %52, %cst_28 [1, 2] : vector<1x1x1xf32> to vector<1xf32>
      %54 = vector.shape_cast %53 : vector<1xf32> to vector<1x1x1xf32>
      %55 = vector.extract %54[0, 0, 0] : f32 from vector<1x1x1xf32>
      %56 = vector.broadcast %55 : f32 to vector<1x1x128xf32>
      %c0_29 = arith.constant 0 : index
      %c0_30 = arith.constant 0 : index
      %c0_31 = arith.constant 0 : index
      %57 = vector.load %arg5[%c0_29, %c0_30, %c0_31] : memref<1x1x128xf32, #tpu.memory_space<vmem>>, vector<1x1x128xf32>
      tpu.vector_store %arg5[%c0_29, %c0_30, %c0_31], %56 {strides = array<i32>} : memref<1x1x128xf32, #tpu.memory_space<vmem>>, vector<1x1x128xf32>,
      %c0_32 = arith.constant 0 : index
      %c0_33 = arith.constant 0 : index
      %58 = vector.load %arg9[%c0_32, %c0_33] : memref<4x1xf32, #tpu.memory_space<vmem>>, vector<4x1xf32>
      %59 = vector.shape_cast %58 : vector<4x1xf32> to vector<1x1x4x1xf32>
      %60 = vector.broadcast %59 : vector<1x1x4x1xf32> to vector<1x1x4x128xf32>
      %c0_34 = arith.constant 0 : index
      %c0_35 = arith.constant 0 : index
      %c0_36 = arith.constant 0 : index
      %c0_37 = arith.constant 0 : index
      %61 = vector.load %arg6[%c0_34, %c0_35, %c0_36, %c0_37] : memref<1x1x4x128xf32, #tpu.memory_space<vmem>>, vector<1x1x4x128xf32>
      tpu.vector_store %arg6[%c0_34, %c0_35, %c0_36, %c0_37], %60 {strides = array<i32>} : memref<1x1x4x128xf32, #tpu.memory_space<vmem>>, vector<1x1x4x128xf32>,
      %c0_38 = arith.constant 0 : index
      %c0_39 = arith.constant 0 : index
      %62 = vector.load %arg10[%c0_38, %c0_39] : memref<4x1xf32, #tpu.memory_space<vmem>>, vector<4x1xf32>
      %63 = vector.shape_cast %62 : vector<4x1xf32> to vector<1x1x4x1xf32>
      %64 = vector.broadcast %63 : vector<1x1x4x1xf32> to vector<1x1x4x128xf32>
      %c0_40 = arith.constant 0 : index
      %c0_41 = arith.constant 0 : index
      %c0_42 = arith.constant 0 : index
      %c0_43 = arith.constant 0 : index
      %65 = vector.load %arg7[%c0_40, %c0_41, %c0_42, %c0_43] : memref<1x1x4x128xf32, #tpu.memory_space<vmem>>, vector<1x1x4x128xf32>
      tpu.vector_store %arg7[%c0_40, %c0_41, %c0_42, %c0_43], %64 {strides = array<i32>} : memref<1x1x4x128xf32, #tpu.memory_space<vmem>>, vector<1x1x4x128xf32>,
    } else {
    }
    return
  }
  func.func @transform_0(%arg0: i32, %arg1: i32, %arg2: i32) -> (i32, i32, i32) {
    %c2_i32 = arith.constant 2 : i32
    %0 = arith.muli %arg1, %c2_i32 : i32
    %1 = arith.addi %0, %arg2 : i32
    %c0_i32 = arith.constant 0 : i32
    %c0_i32_0 = arith.constant 0 : i32
    return %arg0, %c0_i32, %1 : i32, i32, i32
  }
  func.func @transform_1(%arg0: i32, %arg1: i32, %arg2: i32) -> (i32, i32, i32) {
    %c2_i32 = arith.constant 2 : i32
    %0 = arith.muli %arg1, %c2_i32 : i32
    %1 = arith.addi %0, %arg2 : i32
    %c0_i32 = arith.constant 0 : i32
    %c0_i32_0 = arith.constant 0 : i32
    return %arg0, %c0_i32, %1 : i32, i32, i32
  }
  func.func @transform_2(%arg0: i32, %arg1: i32, %arg2: i32) -> (i32, i32, i32) {
    %c0_i32 = arith.constant 0 : i32
    %c0_i32_0 = arith.constant 0 : i32
    return %arg0, %arg1, %c0_i32 : i32, i32, i32
  }
  func.func @transform_3(%arg0: i32, %arg1: i32, %arg2: i32) -> (i32, i32, i32, i32) {
    %c0_i32 = arith.constant 0 : i32
    %c0_i32_0 = arith.constant 0 : i32
    %c0_i32_1 = arith.constant 0 : i32
    return %arg0, %arg1, %c0_i32, %c0_i32_0 : i32, i32, i32, i32
  }
  func.func @transform_4(%arg0: i32, %arg1: i32, %arg2: i32) -> (i32, i32, i32, i32) {
    %c0_i32 = arith.constant 0 : i32
    %c0_i32_0 = arith.constant 0 : i32
    %c0_i32_1 = arith.constant 0 : i32
    return %arg0, %arg1, %c0_i32, %c0_i32_0 : i32, i32, i32, i32
  }
}

</mosaic_0001>

<bundles_post_ra>
// kernel: tpu_custom_call.1
= control target key start
LH: loop header
LB: loop body
LE: loop exit
PB: predicated region body
PF: predicated region fallthrough
CT: control target
= control target key end

     0   :  { %s1285_s0 = inlined_call_operand.hbm [shape: f32[2,4,256], index: 0, kind: input, shape index: {}]   ;;  %s1286_s1 = inlined_call_operand.vmem [shape: s8[2,1,256], index: 1, kind: input, shape index: {}]   ;;  %s1287_s2 = inlined_call_operand.hbm [shape: f32[2,1,128], index: 2, kind: output, shape index: {0}]   ;;  %s1288_s3 = inlined_call_operand.hbm [shape: f32[2,1,4,128], index: 3, kind: output, shape index: {1}]   ;;  %s1289_s4 = inlined_call_operand.hbm [shape: f32[2,1,4,128], index: 4, kind: output, shape index: {2}]  }
   0x1   :  { %1295 = sst [smem:[#allocation20_spill]] %s1285_s0 }
   0x2   :  { %10 = vsyncpa [#allocation6], 0 }
   0x3   :  { %12 = vsyncpa [#allocation6 + $0x1], 0 }
   0x4   :  { %13 = vsyncpa [#allocation7], 0 }
   0x5   :  { %15 = vsyncpa [#allocation7 + $0x1], 0 }
   0x6   :  { %16 = vsyncpa [#allocation10], 0 }
   0x7   :  { %18 = vsyncpa [#allocation10 + $0x1], 0  ;;  %s1005_s15 = smov 0   ;;  %s1007_s16 = smov 0  }
   0x8   :  { %s1009_s17 = smov 0   ;;  %s1011_s18 = smov 0  }
   0x9   :  { %s1013_s19 = smov 0   ;;  %s1015_s20 = smov 0  }
   0xa   :  { %s1017_s21 = smov 0   ;;  %s1019_s22 = smov 0  }
   0xb   :  { %s1021_s23 = smov 0   ;;  %s1023_s24 = smov 0  }
   0xc   :  { %s1025_s25 = smov 0  }
   0xd LB: > { %1296 = sst [smem:[#allocation15_spill]] %s951_s20  ;;  %s1059_s26 = sadd.s32 4294967295, %s971_s25   ;;  %s971_s25 = sphi %s1025_s25, %s24_s25   ;;  %s967_s24 = sphi %s1023_s24, %s1323_s24   ;;  %s963_s23 = sphi %s1021_s23, %s1322_s23   ;;  %s959_s22 = sphi %s1019_s22, %s1321_s22   ;;  %s955_s21 = sphi %s1017_s21, %s1320_s21   ;;  %s951_s20 = sphi %s1015_s20, %s1312_s20   ;;  %s947_s19 = sphi %s1013_s19, %s1319_s19   ;;  %s943_s18 = sphi %s1011_s18, %s1318_s18   ;;  %s939_s17 = sphi %s1009_s17, %s1317_s17   ;;  %s935_s16 = sphi %s1007_s16, %s1316_s16   ;;  %s931_s15 = sphi %s1005_s15, %s1315_s15  }
   0xe   : > { %s1292_s27 = sadd.s32 4294967294, %s971_s25   ;;  %s36_s28 = sadd.s32 1, %s963_s23 }
   0xf   : > { %s43_s29 = sadd.s32 1, %s967_s24  ;;  %p37_p0 = scmp.ge.s32.totalorder %s36_s28, 2 }
  0x10   : > { %s56_s30 = sadd.s32 1, %s951_s20  ;;  %p63_p1 = scmp.ne.s32.totalorder %s951_s20, %s947_s19 }
  0x11   : > { %p64_p2 = scmp.eq.s32.totalorder %s971_s25, 0  ;;  %s1325_s28 = smov (%p37_p0, %s36_s28), 0 }
  0x12   : > { %1297 = sst [smem:[#allocation16_spill]] %s1325_s28  ;;  %s1327_s29 = smov (!%p37_p0, %s43_s29), %s967_s24 }
  0x13   : > { %s52_s5 = ssub.s32 %s963_s23, %s1325_s28  ;;  %p1073_p3 = por %p64_p2, %p63_p1 }
  0x14   : > { %p45_p4 = scmp.ge.s32.totalorder %s1327_s29, 2  ;;  %p69_p5 = scmp.ne.s32.totalorder %s947_s19, %s943_s18 }
  0x15   : > { %p70_p6 = scmp.eq.s32.totalorder %s1059_s26, 0  ;;  %s116_s7 = sadd.s32 1, %s939_s17 }
  0x16   : > { %s1329_s29 = smov (%p45_p4, %s1327_s29), 0  ;;  %p126_p8 = scmp.ne.s32.totalorder %s939_s17, %s935_s16 }
  0x17   : > { %1299 = sst [smem:[#allocation17_spill]] %s1329_s29  ;;  %p1082_p7 = por %p70_p6, %p69_p5 }
  0x18   : > { %s51_s9 = ssub.s32 %s967_s24, %s1329_s29  ;;  %p127_p9 = scmp.eq.s32.totalorder %s1059_s26, 3 }
  0x19   : > { %s53_s10 = sor.u32 %s52_s5, %s51_s9  ;;  %p114_p10 = scmp.eq.s32.totalorder %s51_s9, 0 }
  0x1a   : > { %p54_p11 = scmp.eq.s32.totalorder %s53_s10, 0  ;;  %p1091_p12 = por %p127_p9, %p126_p8 }
  0x1b   : > { %s1096_s12 = scalar_select %p114_p10, %s939_s17, %s116_s7  }
  0x1c   : > { %s1099_s13 = scalar_select %p54_p11, %s951_s20, %s56_s30  }
  0x1d   : > { %1302 = sst [smem:[#allocation18_spill]] %s1096_s12  ;;  %p132_p13 = scmp.ne.s32.totalorder %s935_s16, %s931_s15 }
  0x1e   : > { %1303 = sst [smem:[#allocation19_spill]] %s1099_s13  ;;  %p133_p0 = scmp.eq.s32.totalorder %s1292_s27, 3 }
  0x1f   : > { %p667_p1 = scmp.lt.s32.totalorder %s971_s25, 4  ;;  %s209_s18 = sand.u32 1, %s951_s20  }
  0x20   : > { %p1106_p2 = por %p133_p0, %p132_p13  ;;  %s625_s5 = sshll.u32 %s209_s18, 2 }
  0x21   : > { %s626_s9 = sshll.u32 %s967_s24, 1  ;;  %s213_s29 = scalar_lea.vmem [#allocation5], %s625_s5 }
  0x22   : > { %s1304_s14 = scalar_select %p1106_p2, 1, 0 }
  0x23   : > { %s220_s10 = sadd.s32 %s963_s23, %s626_s9  ;;  %s224_s28 = sshll.u32 %s213_s29, 4  ;;  %s225_s28 = int_to_ptr.vmem [resolvable:$true] %s224_s28 }
  0x24   : > { %s627_s7 = sshll.u32 %s220_s10, 6  ;;  %s1305_s0 = sld [smem:[#allocation20_spill]] }
  0x25   : > { %p1118_p4 = pnand %p667_p1, %p1073_p3  ;;  %p628_p5 = scmp.ge.s32.totalorder %s971_s25, 1 }
  0x26   : > { %p243_p6 = scmp.lt.s32.totalorder %s971_s25, 5  ;;  %s210_s20 = scalar_lea.sflag [#allocation6], %s209_s18 }
  0x27   : > { %p769_p8 = pneg %p1118_p4  ;;  %s780_s9 = scalar_lea.vmem %s225_s28, 64 }
  0x28   : > { %p781_p9 = scmp.ne.s32.totalorder %s225_s28, %s780_s9  ;;  %s973_s29 = smov [#allocation5]  }
  0x29   : > { %s785_s5 = sshll.u32 %s973_s29, 4  ;;  %s786_s5 = int_to_ptr.vmem [resolvable:$false] %s785_s5 }
  0x2a   : > { %s222_s13 = scalar_lea.hbm %s1305_s0, %s627_s7  ;;  %p783_p10 = pnand %p781_p9, %p769_p8 }
  0x2b   : > { %s787_s12 = scalar_lea.vmem %s786_s5, 128  ;;  %p788_p13 = scmp.lt.s32.totalorder %s225_s28, %s786_s5 }
  0x2c   : > { %p784_p11 = pneg %p783_p10  ;;  %p789_p0 = scmp.lt.s32.totalorder %s787_s12, %s780_s9 }
  0x2e   : > { %p790_p3 = por %p789_p0, %p788_p13 }
  0x30   : > { %p791_p1 = pnand %p790_p3, %p784_p11 }
  0x32   : > { %794 = shalt.err (!%p791_p1)
}
  0x33   : > { %656 = dma.hbm_to_vmem [thread:$0]  (!%p1118_p4), %s222_s13, 64, %s225_s28, %s210_s20  }
  0x34   : > { %p244_p2 = pnand %p628_p5, %p243_p6 }
  0x35   : > { %s249_s6 = sand.u32 (!%p244_p2), 1, %s947_s19  }
  0x36   : > { %247 = sbr.rel (%p244_p2) target bundleno = 493 (0x1ed), region = 28  ;;  %s629_s18 = sshll.u32 (!%p244_p2), %s249_s6, 2 }
  0x37   : > { %s250_s10 = scalar_lea.sflag (!%p244_p2), [#allocation6], %s249_s6  ;;  %s253_s7 = scalar_lea.vmem (!%p244_p2), [#allocation5], %s629_s18 }
  0x3b   : > { %918 = dma.done.wait (%p1082_p7), %s250_s10, 64  }
  0x3c   : > { %920 = vsyncadd (%p1082_p7), %s250_s10, 4294967232  ;;  %s1138_s20 = sand.u32 1, %s935_s16   ;;  %p300_p2 = scmp.lt.s32.totalorder %s959_s22, 1 }
  0x3d   : > { %s630_s27 = sshll.u32 %s1138_s20, 2  ;;  %p302_p4 = scmp.lt.s32.totalorder %s955_s21, 1 }
  0x3e   : > { %s301_s28 = scalar_select %p300_p2, %s959_s22, 1 }
  0x3f   : > { %s303_s30 = scalar_select %p302_p4, %s955_s21, 1 }
  0x40   : > { %s632_s13 = sshll.u32 %s301_s28, 1  ;;  %s281_s12 = scalar_lea.vmem [#allocation8], %s1138_s20 }
  0x41   : > { %s305_s9 = sadd.s32 %s632_s13, %s303_s30  ;;  %s1149_s6 = scalar_lea.vmem [#allocation9], %s630_s27 }
  0x42   : > { %s306_s8 = scalar_lea.vmem %s1286_s1, %s305_s9  ;;  %s1151_s18 = scalar_lea.vmem [#allocation11], %s630_s27 }
  0x43   : > { %p633_p7 = scmp.ne.s32.totalorder %s955_s21, 0 }
  0x45   : > { %312 = sbr.rel (%p633_p7) target bundleno = 77 (0x4d), region = 36 }
  0x4a   : > { %vm313_vm0 = vcmask 0   ;;  %vm315_vm1 = vcmask 3072   ;;  %v974_v0 = vmov 0.0  }
  0x4b   : > { %314 = vst.msk [vmem:[#allocation2] sm:$0x1] %vm313_vm0, %v974_v0 }
  0x4c   : > { %316 = vst.msk [vmem:[#allocation3] sm:$0xf] %vm315_vm1, %v974_v0  ;;  %317 = vst.msk [vmem:[#allocation4] sm:$0xf] %vm315_vm1, %v974_v0 }
  0x4d PF: > { %v318_v1 = vld [vmem:[%s253_s7] sm:$0xf]  ;;  %vm321_vm2 = vcmask 1043456   ;;  %v344_v10 = vlaneseq  ;;  %v319_v13 = vld [vmem:[%s306_s8] sm:$0x1]  ;;  %v975_v36 = vmov 0.0  }
  0x4e   : > { %v322_v2 = vsel %vm321_vm2, %v318_v1, -inf  ;;  %v320_v14 = vunpack.c.0.s8 %v319_v13  ;;  %vm368_vm4 = vcmask 0   ;;  %vm375_vm5 = vcmask 3072   ;;  %p635_p5 = scmp.ne.s32.totalorder %s955_s21, 1 }
  0x4f   : > { %v323_v3 = vrot.slane %v322_v2, 4  ;;  %v345_v12 = vshrl.u32 %v344_v10, 7 }
  0x51   : > { %v324_v4 = vmax.f32 %v322_v2, %v323_v3  ;;  %v348_v15 = vsub.s32 0, %v345_v12 }
  0x52   : > { %v364_v45 = vld [vmem:[#allocation2] sm:$0x1] }
  0x53   : > { %v325_v5 = vrot.slane %v324_v4, 2  ;;  %v349_v16 = vrot.slane %v320_v14, %v348_v15  ;;  %v377_v46 = vld [vmem:[#allocation4] sm:$0xf]  ;;  %v370_v51 = vld [vmem:[#allocation3] sm:$0xf] }
  0x55   : > { %v326_v6 = vmax.f32 %v324_v4, %v325_v5  ;;  %vm350_vm3 = vcmp.eq.s32.totalorder %v349_v16, %v345_v12 }
  0x56   : > { %v353_v20 = vsel %vm350_vm3, %v318_v1, 0.0  ;;  %v634_v37 = vsel %vm350_vm3, 1.0, %v975_v36 }
  0x57   : > { %v327_v7 = vrot.slane %v326_v6, 1  ;;  %v354_v22 = vsel %vm321_vm2, %v353_v20, 0.0 }
  0x58   : > { %v355_v25 = vrot.slane %v354_v22, 4 }
  0x59   : > { %v328_v8 = vmax.f32 %v326_v6, %v327_v7 }
  0x5a   : > { %v356_v28 = vadd.f32 %v355_v25, %v354_v22 }
  0x5b   : > { %v329_v9 = vsub.f32 %v318_v1, %v328_v8 }
  0x5c   : > { %v357_v29 = vrot.slane %v356_v28, 2 }
  0x5d   : > { %v330_v11 = vmul.f32 1.442695, %v329_v9 }
  0x5e   : > { %v358_v30 = vadd.f32 %v357_v29, %v356_v28 }
  0x5f   : > { %760 = vpow2.f32 %v330_v11 }
  0x60   : > { %v359_v31 = vrot.slane %v358_v30, 1 }
  0x62   : > { %v360_v35 = vadd.f32 %v359_v31, %v358_v30 }
  0x6c   : > { %v761_v17 = vpop.eup %760 }
  0x6d   : > { %v332_v18 = vsel %vm321_vm2, %v761_v17, 0.0 }
  0x6e   : > { %v333_v19 = vrot.slane %v332_v18, 4 }
  0x70   : > { %v334_v21 = vadd.f32 %v333_v19, %v332_v18 }
  0x72   : > { %v335_v23 = vrot.slane %v334_v21, 2 }
  0x74   : > { %v336_v24 = vadd.f32 %v335_v23, %v334_v21 }
  0x76   : > { %v337_v26 = vrot.slane %v336_v24, 1 }
  0x78   : > { %v338_v27 = vadd.f32 %v337_v26, %v336_v24 }
  0x7a   : > { %762 = vlog2.f32 %v338_v27 }
  0x7b   : > { %764 = vrcp.f32 %v338_v27 }
  0x87   : > { %v763_v32 = vpop.eup %762 }
  0x88   : > { %v765_v33 = vpop.eup %764  ;;  %v342_v34 = vmul.f32 0.6931472, %v763_v32 }
  0x89   : > { %v340_v38 = vmul.f32 %v765_v33, %v761_v17 }
  0x8a   : > { %v343_v39 = vadd.f32 %v342_v34, %v328_v8 }
  0x8b   : > { %v363_v40 = vadd.f32 %v634_v37, %v340_v38  ;;  %v362_v42 = vsel %vm350_vm3, %v340_v38, 0.0 }
  0x8c   : > { %v361_v41 = vsub.f32 %v343_v39, %v360_v35  ;;  %v371_v44 = vsel %vm321_vm2, %v362_v42, 0.0 }
  0x8d   : > { %v378_v43 = vsel %vm321_vm2, %v363_v40, 0.0 }
  0x8e   : > { %365 = vadd.xlane.f32.xlu0 %v361_v41  ;;  %379 = vadd.xlane.f32.xlu1 %v378_v43 }
  0x92   : > { %372 = vadd.xlane.f32.xlu0 %v371_v44 }
 0x117   : > { %v366_v47 = vpop.xlane.xlu0 %365  ;;  %v380_v48 = vpop.xlane.xlu1 %379 }
 0x118   : > { %v367_v49 = vadd.f32 %v366_v47, %v364_v45  ;;  %v381_v50 = vadd.f32 %v380_v48, %v377_v46 }
 0x11a   : > { %369 = vst.msk [vmem:[#allocation2] sm:$0x1] %vm368_vm4, %v367_v49  ;;  %386 = sbr.rel (%p635_p5) target bundleno = 423 (0x1a7), region = 40 }
 0x11b   : > { %382 = vst.msk [vmem:[#allocation4] sm:$0xf] %vm375_vm5, %v381_v50  ;;  %v373_v52 = vpop.xlane.xlu0 %372 }
 0x11c   : > { %v374_v53 = vadd.f32 %v373_v52, %v370_v51 }
 0x11e   : > { %376 = vst.msk [vmem:[#allocation3] sm:$0xf] %vm375_vm5, %v374_v53 }
 0x11f   : > { %v976_v55 = vmov 0  }
 0x120   : > { %766 = vset.pattern.permute.xlu0 %v976_v55 }
 0x121   : > { %v387_v56 = vld [vmem:[#allocation2] sm:$0x1] }
 0x122   : > { %643 = vpush %v387_v56  ;;  %v399_v57 = vld [vmem:[#allocation4] sm:$0xf] }
 0x125   : > { %v392_v54 = vld [vmem:[#allocation3] sm:$0xf] }
 0x126   : > { %395 = vperm.xlu0 %766, %v392_v54  }
 0x12a   : > { %402 = vperm.xlu0 %766, %v399_v57  }
 0x153   : > { %s644_s10 = spop %643 }
 0x154   : > { %v390_v58 = vstv %s644_s10 }
 0x155   : > { %391 = vst [vmem:[%s281_s12] sm:$0x1] %v390_v58 }
 0x1a1   : > { %v396_v59 = vpop.permute.xlu0 %395 }
 0x1a2   : > { %398 = vst [vmem:[%s1149_s6] sm:$0xf] %v396_v59 }
 0x1a5   : > { %v403_v60 = vpop.permute.xlu0 %402 }
 0x1a6   : > { %405 = vst [vmem:[%s1151_s18] sm:$0xf] %v403_v60 }
 0x1a7 PF: > { %s410_s21 = sand.u32 1, %s1059_s26   ;;  %s1294_s7 = sshll.u32 %s959_s22, 6 }
 0x1a8   : > { %s1174_s13 = scalar_lea.hbm %s1288_s3, %s1294_s7  ;;  %s444_s30 = sshll.u32 %s1149_s6, 4  ;;  %s445_s30 = int_to_ptr.vmem [resolvable:$true] %s444_s30 }
 0x1a9   : > { %s638_s9 = sshll.u32 %s959_s22, 4  ;;  %s1178_s29 = scalar_lea.sflag [#allocation10], %s410_s21 }
 0x1aa   : > { %s795_s5 = scalar_lea.vmem %s445_s30, 64  ;;  %s977_s8 = smov [#allocation9]  }
 0x1ab   : > { %p796_p6 = scmp.ne.s32.totalorder %s445_s30, %s795_s5  ;;  %s799_s10 = sshll.u32 %s977_s8, 4  ;;  %s800_s10 = int_to_ptr.vmem [resolvable:$false] %s799_s10 }
 0x1ac   : > { %s801_s26 = scalar_lea.vmem %s800_s10, 128  ;;  %p802_p10 = scmp.lt.s32.totalorder %s445_s30, %s800_s10 }
 0x1ad   : > { %p797_p8 = pnand %p796_p6, %p1091_p12  ;;  %p803_p11 = scmp.lt.s32.totalorder %s801_s26, %s795_s5 }
 0x1af   : > { %p798_p9 = pneg %p797_p8  ;;  %p804_p13 = por %p803_p11, %p802_p10 }
 0x1b1   : > { %p805_p0 = pnand %p804_p13, %p798_p9 }
 0x1b3   : > { %808 = shalt.err (!%p805_p0)
}
 0x1b4   : > { %s809_s6 = scalar_lea.hbm %s1174_s13, 64  ;;  %s813_s28 = scalar_lea.hbm %s1288_s3, 128 }
 0x1b5   : > { %p810_p3 = scmp.ne.s32.totalorder %s1174_s13, %s809_s6  ;;  %p814_p4 = scmp.lt.s32.totalorder %s1174_s13, %s1288_s3 }
 0x1b6   : > { %p815_p7 = scmp.lt.s32.totalorder %s813_s28, %s809_s6 }
 0x1b7   : > { %p811_p1 = pnand %p810_p3, %p1091_p12 }
 0x1b8   : > { %p816_p5 = por %p815_p7, %p814_p4 }
 0x1b9   : > { %p812_p2 = pneg %p811_p1 }
 0x1bb   : > { %p817_p6 = pnand %p816_p5, %p812_p2 }
 0x1bd   : > { %820 = shalt.err (!%p817_p6)
}
 0x1be   : > { %648 = dma.vmem_to_hbm [thread:$0]  (%p1091_p12), %s445_s30, 64, %s1174_s13, %s1178_s29  }
 0x1bf   : > { %s1200_s26 = scalar_lea.hbm %s1287_s2, %s638_s9  ;;  %s430_s7 = sshll.u32 %s281_s12, 4  ;;  %s431_s7 = int_to_ptr.vmem [resolvable:$true] %s430_s7 }
 0x1c0   : > { %s1307_s6 = sshll.u32 %s959_s22, 6  ;;  %s407_s8 = scalar_lea.sflag [#allocation7], %s1138_s20 }
 0x1c1   : > { %s1209_s28 = scalar_lea.hbm %s1289_s4, %s1307_s6  ;;  %s821_s0 = scalar_lea.vmem %s431_s7, 16 }
 0x1c2   : > { %p822_p8 = scmp.ne.s32.totalorder %s431_s7, %s821_s0  ;;  %s978_s13 = smov [#allocation8]  }
 0x1c3   : > { %s825_s30 = sshll.u32 %s978_s13, 4  ;;  %s826_s30 = int_to_ptr.vmem [resolvable:$false] %s825_s30 }
 0x1c4   : > { %p823_p9 = pnand %p822_p8, %p1091_p12  ;;  %s827_s9 = scalar_lea.vmem %s826_s30, 32 }
 0x1c5   : > { %p828_p11 = scmp.lt.s32.totalorder %s431_s7, %s826_s30  ;;  %p829_p13 = scmp.lt.s32.totalorder %s827_s9, %s821_s0 }
 0x1c6   : > { %p824_p10 = pneg %p823_p9 }
 0x1c7   : > { %p830_p0 = por %p829_p13, %p828_p11 }
 0x1c9   : > { %p831_p3 = pnand %p830_p0, %p824_p10 }
 0x1cb   : > { %834 = shalt.err (!%p831_p3)
}
 0x1cc   : > { %s835_s22 = scalar_lea.hbm %s1200_s26, 16  ;;  %s839_s5 = scalar_lea.hbm %s1287_s2, 32 }
 0x1cd   : > { %p836_p1 = scmp.ne.s32.totalorder %s1200_s26, %s835_s22  ;;  %p840_p7 = scmp.lt.s32.totalorder %s1200_s26, %s1287_s2 }
 0x1ce   : > { %p841_p5 = scmp.lt.s32.totalorder %s839_s5, %s835_s22 }
 0x1cf   : > { %p837_p2 = pnand %p836_p1, %p1091_p12 }
 0x1d0   : > { %p842_p6 = por %p841_p5, %p840_p7 }
 0x1d1   : > { %p838_p4 = pneg %p837_p2 }
 0x1d3   : > { %p843_p8 = pnand %p842_p6, %p838_p4 }
 0x1d5   : > { %846 = shalt.err (!%p843_p8)
}
 0x1d6   : > { %647 = dma.vmem_to_hbm [thread:$0]  (%p1091_p12), %s431_s7, 16, %s1200_s26, %s407_s8  }
 0x1d7   : > { %s458_s0 = sshll.u32 %s1151_s18, 4  ;;  %s979_s27 = smov [#allocation11]   ;;  %s459_s0 = int_to_ptr.vmem [resolvable:$true] %s458_s0 }
 0x1d8   : > { %s847_s21 = scalar_lea.vmem %s459_s0, 64  ;;  %s851_s13 = sshll.u32 %s979_s27, 4  ;;  %s852_s13 = int_to_ptr.vmem [resolvable:$false] %s851_s13 }
 0x1d9   : > { %p848_p9 = scmp.ne.s32.totalorder %s459_s0, %s847_s21  ;;  %s853_s30 = scalar_lea.vmem %s852_s13, 128 }
 0x1da   : > { %p854_p13 = scmp.lt.s32.totalorder %s459_s0, %s852_s13  ;;  %p855_p0 = scmp.lt.s32.totalorder %s853_s30, %s847_s21 }
 0x1db   : > { %p849_p10 = pnand %p848_p9, %p1091_p12 }
 0x1dc   : > { %p856_p3 = por %p855_p0, %p854_p13 }
 0x1dd   : > { %p850_p11 = pneg %p849_p10 }
 0x1df   : > { %p857_p1 = pnand %p856_p3, %p850_p11 }
 0x1e1   : > { %860 = shalt.err (!%p857_p1)
}
 0x1e2   : > { %s861_s18 = scalar_lea.hbm %s1209_s28, 64  ;;  %s865_s8 = scalar_lea.hbm %s1289_s4, 128 }
 0x1e3   : > { %p862_p2 = scmp.ne.s32.totalorder %s1209_s28, %s861_s18  ;;  %p866_p5 = scmp.lt.s32.totalorder %s1209_s28, %s1289_s4 }
 0x1e4   : > { %p867_p6 = scmp.lt.s32.totalorder %s865_s8, %s861_s18 }
 0x1e5   : > { %p863_p4 = pnand %p862_p2, %p1091_p12 }
 0x1e6   : > { %p868_p8 = por %p867_p6, %p866_p5 }
 0x1e7   : > { %p864_p7 = pneg %p863_p4 }
 0x1e9   : > { %p869_p9 = pnand %p868_p8, %p864_p7 }
 0x1eb   : > { %872 = shalt.err (!%p869_p9)
}
 0x1ec   : > { %649 = dma.vmem_to_hbm [thread:$0]  (%p1091_p12), %s459_s0, 64, %s1209_s28, %s1178_s29  }
 0x1ed PF: > { %p668_p10 = scmp.ge.s32.totalorder %s971_s25, 2  ;;  %s470_s20 = sand.u32 1, %s931_s15  }
 0x1ee   : > { %p1308_p11 = scmp.ne.s32.totalorder %s1304_s14, 0  ;;  %s471_s12 = scalar_lea.sflag [#allocation7], %s470_s20 }
 0x1f0   : > { %p658_p13 = pnand %p668_p10, %p1308_p11 }
 0x1f2   : > { %p659_p0 = pneg %p658_p13 }
 0x1f4   : > { %922 = dma.done.wait (%p659_p0), %s471_s12, 16  }
 0x1f5   : > { %924 = vsyncadd (%p659_p0), %s471_s12, 4294967280  ;;  %s1309_s5 = sadd.s32 4294967294, %s971_s25  }
 0x1f6   : > { %s478_s10 = sand.u32 1, %s1309_s5  }
 0x1f7   : > { %s479_s6 = scalar_lea.sflag [#allocation10], %s478_s10 }
 0x1f8   : > { %926 = dma.done.wait (%p659_p0), %s479_s6, 128  }
 0x1f9   : > { %928 = vsyncadd (%p659_p0), %s479_s6, 4294967168  ;;  %s24_s25 = sadd.s32 1, %s971_s25   ;;  %s1310_s11 = sld [smem:[#allocation18_spill]] }
 0x1fa   : > { %p21_p12 = scmp.ge.s32.totalorder %s24_s25, 6   ;;  %s1311_s29 = sld [smem:[#allocation15_spill]] }
 0x1fb   : > { %s1312_s20 = sld [smem:[#allocation19_spill]]  ;;  %s1315_s15 = smov %s935_s16 }
 0x1fc   : > { %s1313_s14 = sld [smem:[#allocation16_spill]]  ;;  %s1316_s16 = smov %s939_s17 }
 0x1fd   : > { %s1314_s28 = sld [smem:[#allocation17_spill]]  ;;  %s1318_s18 = smov %s947_s19 }
 0x1fe   : > { %s1320_s21 = smov %s963_s23  ;;  %s1321_s22 = smov %s967_s24 }
 0x1ff   : > { %s1317_s17 = smov %s1310_s11  ;;  %23 = sbr.rel (!%p21_p12) target bundleno = 13 (0xd), region = 116 }
 0x200   : > { %s1319_s19 = smov %s1311_s29 }
 0x202   : > { %s1322_s23 = smov %s1313_s14 }
 0x203   : > { %s1323_s24 = smov %s1314_s28 }
 0x204   :  { %493 = vsyncpa [#allocation6], 1 }
 0x205   :  { %495 = vsyncpa [#allocation6 + $0x1], 1 }
 0x206   :  { %496 = vsyncpa [#allocation7], 1 }
 0x207   :  { %498 = vsyncpa [#allocation7 + $0x1], 1 }
 0x208   :  { %499 = vsyncpa [#allocation10], 1 }
 0x209   :  { %501 = vsyncpa [#allocation10 + $0x1], 1 }

</bundles_post_ra>
